<compile_context>
chip_gen: v6e
topology: v6e:2x2x1
jax: 0.10.0
libtpu: 0.0.40
codegen_flags: <defaults>
</compile_context>

<pallas_src>
import math

import jax
import jax.numpy as jnp
from jax.experimental import pallas as pl
from jax.experimental.pallas import tpu as pltpu


def _pick_block_batch(B, target):
    """Largest tile-friendly batch block <= target, preferring a divisor of B."""
    bt = max(1, min(target, B))
    if bt >= B:
        return B                               # single block spanning the batch
    # Keep the sublane (second-to-last) dim a multiple of 8 when it doesn't
    # span the full batch.
    bt = max(8, (bt // 8) * 8)
    if bt >= B:
        return B
    # Prefer a divisor of B -> no ragged last block, no padding anywhere.
    for cand in range(bt, 7, -8):
        if B % cand == 0:
            return cand
    return bt                                   # ragged last block (Pallas masks OOB)


def attention_kernel(enc_ref, dec_ref, wqk_ref, bqk_ref, wv_ref, bv_ref, out_ref):
    enc = enc_ref[...]                                             # (Bt, T, E)

    # Fused, pre-scaled query -> encoder-space projection.           (Bt, E)
    m = jnp.dot(dec_ref[...], wqk_ref[...],
                preferred_element_type=jnp.float32) + bqk_ref[...]

    # scores[b, t] = enc[b, t, :] . m[b, :]  (VPU mul + lane reduce)  (Bt, T)
    s = jnp.sum(enc * m[:, None, :], axis=-1)

    # Softmax over T in f32; reciprocal runs on the EUP slot.
    s_max = jnp.max(s, axis=-1, keepdims=True)
    e = jnp.exp(s - s_max)
    p = e * pl.reciprocal(jnp.sum(e, axis=-1, keepdims=True), approx=True)

    # ctx[b, :] = sum_t p[b, t] * enc[b, t, :]  (VPU mul + reduce)    (Bt, E)
    ctx = jnp.sum(p[:, :, None] * enc, axis=1)

    # out = ctx @ Wv + bv  (values never materialized; sum(p)==1)     (Bt, V)
    out = jnp.dot(ctx, wv_ref[...],
                  preferred_element_type=jnp.float32) + bv_ref[...]
    out_ref[...] = out.astype(out_ref.dtype)


def attention_forward(encoder_states, decoder_state, params, *, block_batch=None):
    """encoder_states: (B, T, E); decoder_state: (B, D) -> (B, V) float32."""
    B, T, E = encoder_states.shape
    _, D = decoder_state.shape
    wk = params["wk"]                      # (E, K)   (bk cancels in the softmax)
    wq, bq = params["wq"], params["bq"]    # (D, K), (1, K)
    wv, bv = params["wv"], params["bv"]    # (E, V), (1, V)
    K = wk.shape[1]
    V = wv.shape[1]

    # Fold the 1/sqrt(K) scale and the Wk projection into the query weights
    # once, outside the kernel (tiny one-time matmuls).
    inv_scale = 1.0 / math.sqrt(float(K))
    wqk = (wq.astype(jnp.float32) @ wk.astype(jnp.float32).T) * inv_scale  # (D, E)
    bqk = (bq.astype(jnp.float32) @ wk.astype(jnp.float32).T) * inv_scale  # (1, E)

    # ---- batch blocking --------------------------------------------------
    # Budget the double-buffered per-step blocks against the smallest default
    # scoped VMEM (16 MiB on v5e; 32 MiB on v6e/v7x): stay under ~8 MiB total.
    bytes_per_row = encoder_states.dtype.itemsize * T * E + 4 * (D + V)
    vmem_cap = max(8, (8 * 1024 * 1024) // (2 * bytes_per_row))
    target = min(block_batch if block_batch is not None else 1024, vmem_cap, B)
    # Keep >= 2 grid steps when the batch is big enough so the "parallel"
    # axis can split across v7x's two TensorCores.
    if B >= 16:
        target = min(target, pl.cdiv(B, 2))
    Bt = _pick_block_batch(B, target)
    num_blocks = pl.cdiv(B, Bt)
    # TODO(synk): if Bt ends up tiny (small B) and the grid is long, add
    # pipeline_mode=pl.Buffered(3) on the encoder_states BlockSpec to hide the
    # per-block DMA issue latency.

    grid_spec = pltpu.PrefetchScalarGridSpec(
        num_scalar_prefetch=0,
        grid=(num_blocks,),
        in_specs=[
            pl.BlockSpec((Bt, T, E), lambda b: (b, 0, 0)),   # encoder_states
            pl.BlockSpec((Bt, D),    lambda b: (b, 0)),      # decoder_state
            pl.BlockSpec((D, E),     lambda b: (0, 0)),      # Wqk (fused, scaled)
            pl.BlockSpec((1, E),     lambda b: (0, 0)),      # bqk
            pl.BlockSpec((E, V),     lambda b: (0, 0)),      # Wv
            pl.BlockSpec((1, V),     lambda b: (0, 0)),      # bv
        ],
        out_specs=pl.BlockSpec((Bt, V), lambda b: (b, 0)),
    )

    out = pl.pallas_call(
        attention_kernel,
        out_shape=jax.ShapeDtypeStruct((B, V), jnp.float32),
        grid_spec=grid_spec,
        compiler_params=pltpu.CompilerParams(
            dimension_semantics=("parallel",)),
    )(encoder_states, decoder_state, wqk, bqk, wv, bv)

    return out


def attention_reference(encoder_states, decoder_state, params):
    """Pure-JAX reference mirroring the PyTorch forward exactly."""
    keys = encoder_states @ params["wk"] + params["bk"]          # (B, T, K)
    values = encoder_states @ params["wv"] + params["bv"]        # (B, T, V)
    query = decoder_state @ params["wq"] + params["bq"]          # (B, K)
    scale = jnp.sqrt(jnp.float32(params["wk"].shape[1]))
    scores = jnp.einsum("btk,bk->bt", keys, query) / scale       # (B, T)
    p = jax.nn.softmax(scores, axis=1)                           # (B, T)
    return jnp.einsum("bt,btv->bv", p, values)                   # (B, V)


if __name__ == "__main__":
    # Small shapes consistent with the module.
    B, T = 2, 8
    encoder_dim, decoder_dim, key_dim, value_dim = 32, 16, 32, 32

    key = jax.random.PRNGKey(0)
    k_enc, k_dec, k_wk, k_bk, k_wq, k_bq, k_wv, k_bv = jax.random.split(key, 8)

    encoder_states = jax.random.normal(k_enc, (B, T, encoder_dim), jnp.float32)
    decoder_state = jax.random.normal(k_dec, (B, decoder_dim), jnp.float32)

    # Parameters as (in_dim, out_dim) weights and (1, out_dim) biases.
    params = {
        "wk": 0.1 * jax.random.normal(k_wk, (encoder_dim, key_dim), jnp.float32),
        "bk": 0.1 * jax.random.normal(k_bk, (1, key_dim), jnp.float32),
        "wq": 0.1 * jax.random.normal(k_wq, (decoder_dim, key_dim), jnp.float32),
        "bq": 0.1 * jax.random.normal(k_bq, (1, key_dim), jnp.float32),
        "wv": 0.1 * jax.random.normal(k_wv, (encoder_dim, value_dim), jnp.float32),
        "bv": 0.1 * jax.random.normal(k_bv, (1, value_dim), jnp.float32),
    }

    out = attention_forward(encoder_states, decoder_state, params)
    out = jax.block_until_ready(out)

    ref = attention_reference(encoder_states, decoder_state, params)
    assert out.shape == (B, value_dim)
    # Tolerance covers the algebraic re-association and the approximate (EUP)
    # reciprocal used in the softmax normalization.
    assert jnp.allclose(out, ref, atol=2e-3, rtol=2e-3), "mismatch vs reference"

    print("KERNEL_OK")
</pallas_src>

<mosaic_0001>
module attributes {stable_mosaic.version = 11 : i64} {
  func.func @attention_kernel(%arg0: i32, %arg1: memref<2x8x32xf32, #tpu.memory_space<vmem>>, %arg2: memref<2x16xf32, #tpu.memory_space<vmem>>, %arg3: memref<16x32xf32, #tpu.memory_space<vmem>>, %arg4: memref<1x32xf32, #tpu.memory_space<vmem>>, %arg5: memref<32x32xf32, #tpu.memory_space<vmem>>, %arg6: memref<1x32xf32, #tpu.memory_space<vmem>>, %arg7: memref<2x32xf32, #tpu.memory_space<vmem>>) attributes {dimension_semantics = [#tpu.dimension_semantics<parallel>], iteration_bounds = array<i64: 1>, scalar_prefetch = 0 : i64, scratch_operands = 0 : i64, tpu.core_type = #tpu.core_type<tc>, window_params = [{transform_indices = @transform_0, window_bounds = array<i64: 2, 8, 32>}, {transform_indices = @transform_1, window_bounds = array<i64: 2, 16>}, {pipeline_mode = #tpu.pipeline_mode<synchronous>, transform_indices = @transform_2, window_bounds = array<i64: 16, 32>}, {pipeline_mode = #tpu.pipeline_mode<synchronous>, transform_indices = @transform_3, window_bounds = array<i64: 1, 32>}, {pipeline_mode = #tpu.pipeline_mode<synchronous>, transform_indices = @transform_4, window_bounds = array<i64: 32, 32>}, {pipeline_mode = #tpu.pipeline_mode<synchronous>, transform_indices = @transform_5, window_bounds = array<i64: 1, 32>}, {transform_indices = @transform_6, window_bounds = array<i64: 2, 32>}]} {
    %c0 = arith.constant 0 : index
    %c0_0 = arith.constant 0 : index
    %c0_1 = arith.constant 0 : index
    %0 = vector.load %arg1[%c0, %c0_0, %c0_1] : memref<2x8x32xf32, #tpu.memory_space<vmem>>, vector<2x8x32xf32>
    %c0_2 = arith.constant 0 : index
    %c0_3 = arith.constant 0 : index
    %1 = vector.load %arg2[%c0_2, %c0_3] : memref<2x16xf32, #tpu.memory_space<vmem>>, vector<2x16xf32>
    %c0_4 = arith.constant 0 : index
    %c0_5 = arith.constant 0 : index
    %2 = vector.load %arg3[%c0_4, %c0_5] : memref<16x32xf32, #tpu.memory_space<vmem>>, vector<16x32xf32>
    %cst = arith.constant dense<0.000000e+00> : vector<2x32xf32>
    %3 = tpu.matmul %1, %2, %cst {dimension_numbers = #tpu.dot_dimension_numbers<[1], [0], [0], [1], [0, 0, 1, 1], [], []>} : vector<2x16xf32>, vector<16x32xf32>, vector<2x32xf32> -> vector<2x32xf32>
    %c0_6 = arith.constant 0 : index
    %c0_7 = arith.constant 0 : index
    %4 = vector.load %arg4[%c0_6, %c0_7] : memref<1x32xf32, #tpu.memory_space<vmem>>, vector<1x32xf32>
    %5 = vector.broadcast %4 : vector<1x32xf32> to vector<2x32xf32>
    %6 = arith.addf %3, %5 : vector<2x32xf32>
    %7 = vector.shape_cast %6 : vector<2x32xf32> to vector<2x1x32xf32>
    %8 = vector.broadcast %7 : vector<2x1x32xf32> to vector<2x8x32xf32>
    %9 = arith.mulf %0, %8 : vector<2x8x32xf32>
    %cst_8 = arith.constant dense<0.000000e+00> : vector<2x8xf32>
    %10 = vector.multi_reduction <add>, %9, %cst_8 [2] : vector<2x8x32xf32> to vector<2x8xf32>
    %cst_9 = arith.constant dense<0xFF800000> : vector<2xf32>
    %11 = vector.multi_reduction <maximumf>, %10, %cst_9 [1] : vector<2x8xf32> to vector<2xf32>
    %12 = vector.shape_cast %11 : vector<2xf32> to vector<2x1xf32>
    %13 = vector.broadcast %12 : vector<2x1xf32> to vector<2x8xf32>
    %14 = arith.subf %10, %13 : vector<2x8xf32>
    %15 = math.exp %14 : vector<2x8xf32>
    %cst_10 = arith.constant dense<0.000000e+00> : vector<2xf32>
    %16 = vector.multi_reduction <add>, %15, %cst_10 [1] : vector<2x8xf32> to vector<2xf32>
    %17 = vector.shape_cast %16 : vector<2xf32> to vector<2x1xf32>
    %18 = tpu.reciprocal %17 {approx = true} : vector<2x1xf32> -> vector<2x1xf32>
    %19 = vector.broadcast %18 : vector<2x1xf32> to vector<2x8xf32>
    %20 = arith.mulf %15, %19 : vector<2x8xf32>
    %21 = vector.shape_cast %20 : vector<2x8xf32> to vector<2x8x1xf32>
    %22 = vector.broadcast %21 : vector<2x8x1xf32> to vector<2x8x32xf32>
    %23 = arith.mulf %22, %0 : vector<2x8x32xf32>
    %cst_11 = arith.constant dense<0.000000e+00> : vector<2x32xf32>
    %24 = vector.multi_reduction <add>, %23, %cst_11 [1] : vector<2x8x32xf32> to vector<2x32xf32>
    %c0_12 = arith.constant 0 : index
    %c0_13 = arith.constant 0 : index
    %25 = vector.load %arg5[%c0_12, %c0_13] : memref<32x32xf32, #tpu.memory_space<vmem>>, vector<32x32xf32>
    %cst_14 = arith.constant dense<0.000000e+00> : vector<2x32xf32>
    %26 = tpu.matmul %24, %25, %cst_14 {dimension_numbers = #tpu.dot_dimension_numbers<[1], [0], [0], [1], [0, 0, 1, 1], [], []>} : vector<2x32xf32>, vector<32x32xf32>, vector<2x32xf32> -> vector<2x32xf32>
    %c0_15 = arith.constant 0 : index
    %c0_16 = arith.constant 0 : index
    %27 = vector.load %arg6[%c0_15, %c0_16] : memref<1x32xf32, #tpu.memory_space<vmem>>, vector<1x32xf32>
    %28 = vector.broadcast %27 : vector<1x32xf32> to vector<2x32xf32>
    %29 = arith.addf %26, %28 : vector<2x32xf32>
    %c0_17 = arith.constant 0 : index
    %c0_18 = arith.constant 0 : index
    %30 = vector.load %arg7[%c0_17, %c0_18] : memref<2x32xf32, #tpu.memory_space<vmem>>, vector<2x32xf32>
    tpu.vector_store %arg7[%c0_17, %c0_18], %29 {strides = array<i32>} : memref<2x32xf32, #tpu.memory_space<vmem>>, vector<2x32xf32>,
    return
  }
  func.func @transform_0(%arg0: i32) -> (i32, i32, i32) {
    %c0_i32 = arith.constant 0 : i32
    %c0_i32_0 = arith.constant 0 : i32
    %c0_i32_1 = arith.constant 0 : i32
    return %arg0, %c0_i32, %c0_i32_0 : i32, i32, i32
  }
  func.func @transform_1(%arg0: i32) -> (i32, i32) {
    %c0_i32 = arith.constant 0 : i32
    %c0_i32_0 = arith.constant 0 : i32
    return %arg0, %c0_i32 : i32, i32
  }
  func.func @transform_2(%arg0: i32) -> (i32, i32) {
    %c0_i32 = arith.constant 0 : i32
    %c0_i32_0 = arith.constant 0 : i32
    %c0_i32_1 = arith.constant 0 : i32
    return %c0_i32, %c0_i32_0 : i32, i32
  }
  func.func @transform_3(%arg0: i32) -> (i32, i32) {
    %c0_i32 = arith.constant 0 : i32
    %c0_i32_0 = arith.constant 0 : i32
    %c0_i32_1 = arith.constant 0 : i32
    return %c0_i32, %c0_i32_0 : i32, i32
  }
  func.func @transform_4(%arg0: i32) -> (i32, i32) {
    %c0_i32 = arith.constant 0 : i32
    %c0_i32_0 = arith.constant 0 : i32
    %c0_i32_1 = arith.constant 0 : i32
    return %c0_i32, %c0_i32_0 : i32, i32
  }
  func.func @transform_5(%arg0: i32) -> (i32, i32) {
    %c0_i32 = arith.constant 0 : i32
    %c0_i32_0 = arith.constant 0 : i32
    %c0_i32_1 = arith.constant 0 : i32
    return %c0_i32, %c0_i32_0 : i32, i32
  }
  func.func @transform_6(%arg0: i32) -> (i32, i32) {
    %c0_i32 = arith.constant 0 : i32
    %c0_i32_0 = arith.constant 0 : i32
    return %arg0, %c0_i32 : i32, i32
  }
}

</mosaic_0001>

<bundles_post_ra>
// kernel: tpu_custom_call.1
= control target key start
LH: loop header
LB: loop body
LE: loop exit
PB: predicated region body
PF: predicated region fallthrough
CT: control target
= control target key end

     0   :  { %11 = vsyncpa [#allocation3], 0  ;;  %s663_s0 = inlined_call_operand.hbm [shape: f32[2,8,32], index: 0, kind: input, shape index: {}]   ;;  %s664_s1 = inlined_call_operand.hbm [shape: f32[2,16], index: 1, kind: input, shape index: {}]   ;;  %s665_s2 = inlined_call_operand.hbm [shape: f32[16,32], index: 2, kind: input, shape index: {}]   ;;  %s666_s3 = inlined_call_operand.vmem [shape: f32[1,32], index: 3, kind: input, shape index: {}]   ;;  %s667_s4 = inlined_call_operand.hbm [shape: f32[32,32], index: 4, kind: input, shape index: {}]   ;;  %s668_s5 = inlined_call_operand.vmem [shape: f32[1,32], index: 5, kind: input, shape index: {}]   ;;  %s669_s6 = inlined_call_operand.hbm [shape: f32[2,32], index: 6, kind: output, shape index: {}]  }
   0x1   :  { %12 = vsyncpa [#allocation6], 0 }
   0x2   :  { %13 = vsyncpa [#allocation9], 0 }
   0x3   :  { %14 = vsyncpa [#allocation4], 0  ;;  %s564_s21 = smov [#allocation5]   ;;  %s565_s23 = smov [#allocation2]  }
   0x4   :  { %s33_s22 = sshll.u32 %s564_s21, 4  ;;  %s20_s24 = sshll.u32 %s565_s23, 4  ;;  %s34_s22 = int_to_ptr.vmem [resolvable:$true] %s33_s22  ;;  %s21_s24 = int_to_ptr.vmem [resolvable:$true] %s20_s24 }
   0x5   :  { %s464_s25 = scalar_lea.vmem %s34_s22, 32  ;;  %p469_p1 = scmp.lt.s32.totalorder %s34_s22, %s34_s22 }
   0x6   :  { %p465_p0 = scmp.ne.s32.totalorder %s34_s22, %s464_s25  ;;  %p470_p2 = scmp.lt.s32.totalorder %s464_s25, %s464_s25 }
   0x8   :  { %p471_p3 = por %p470_p2, %p469_p1 }
   0xa   :  { %p472_p4 = pnand %p471_p3, %p465_p0 }
   0xc   :  { %475 = shalt.err (!%p472_p4)
}
   0xd   :  { %36 = dma.hbm_to_vmem [thread:$0]  %s664_s1, 32, %s34_s22, [#allocation6]  }
   0xe   :  { %s484_s28 = scalar_lea.vmem %s21_s24, 256  ;;  %p489_p6 = scmp.lt.s32.totalorder %s21_s24, %s21_s24 }
   0xf   :  { %p485_p5 = scmp.ne.s32.totalorder %s21_s24, %s484_s28  ;;  %p490_p7 = scmp.lt.s32.totalorder %s484_s28, %s484_s28 }
  0x11   :  { %p491_p8 = por %p490_p7, %p489_p6 }
  0x13   :  { %p492_p9 = pnand %p491_p8, %p485_p5 }
  0x15   :  { %495 = shalt.err (!%p492_p9)
}
  0x16   :  { %s566_s29 = smov 128   ;;  %s567_s30 = smov 8  }
  0x17   :  { %26 = dma.hbm_to_vmem [thread:$0]  %s663_s0, 256, %s21_s24, [#allocation3], %s566_s29, %s566_s29, %s567_s30  }
  0x18   :  { %s568_s9 = smov [#allocation7]   ;;  %s569_s11 = smov [#allocation8]  }
  0x19   :  { %s42_s10 = sshll.u32 %s568_s9, 4  ;;  %s56_s12 = sshll.u32 %s569_s11, 4  ;;  %s43_s10 = int_to_ptr.vmem [resolvable:$true] %s42_s10  ;;  %s57_s12 = int_to_ptr.vmem [resolvable:$true] %s56_s12 }
  0x1a   :  { %s504_s1 = scalar_lea.vmem %s43_s10, 256  ;;  %p509_p11 = scmp.lt.s32.totalorder %s43_s10, %s43_s10 }
  0x1b   :  { %p505_p10 = scmp.ne.s32.totalorder %s43_s10, %s504_s1  ;;  %p510_p12 = scmp.lt.s32.totalorder %s504_s1, %s504_s1 }
  0x1d   :  { %p511_p13 = por %p510_p12, %p509_p11 }
  0x1f   :  { %p512_p0 = pnand %p511_p13, %p505_p10 }
  0x21   :  { %515 = shalt.err (!%p512_p0)
}
  0x22   :  { %48 = dma.hbm_to_vmem [thread:$0]  %s665_s2, 256, %s43_s10, [#allocation6], %s566_s29, %s566_s29, %s567_s30  }
  0x23   :  { %s524_s15 = scalar_lea.vmem %s57_s12, 512  ;;  %p529_p2 = scmp.lt.s32.totalorder %s57_s12, %s57_s12 }
  0x24   :  { %p525_p1 = scmp.ne.s32.totalorder %s57_s12, %s524_s15  ;;  %p530_p3 = scmp.lt.s32.totalorder %s524_s15, %s524_s15 }
  0x26   :  { %p531_p4 = por %p530_p3, %p529_p2 }
  0x28   :  { %p532_p5 = pnand %p531_p4, %p525_p1 }
  0x2a   :  { %535 = shalt.err (!%p532_p5)
}
  0x2b   :  { %62 = dma.hbm_to_vmem [thread:$0]  %s667_s4, 512, %s57_s12, [#allocation9], %s566_s29, %s566_s29, %s567_s30  }
  0x2c   :  { %556 = dma.done.wait [#allocation3], 256  }
  0x2d   :  { %557 = vsyncadd [#allocation3], 4294967040 }
  0x2e   :  { %558 = dma.done.wait [#allocation6], 288  }
  0x2f   :  { %559 = vsyncadd [#allocation6], 4294967008 }
  0x30   :  { %560 = dma.done.wait [#allocation9], 512  }
  0x31   :  { %561 = vsyncadd [#allocation9], 4294966784  ;;  %v570_v0 = vmov 0.0   ;;  %vm571_vm0 = vmmov 0   ;;  %v81_v1 = vld [vmem:[#allocation7 + $0x8] sm:$0xff]  ;;  %v80_v2 = vld [vmem:[#allocation7] sm:$0xff]  ;;  %v167_v6 = vlaneseq }
  0x32   :  { %419 = vmatprep.subr.mxu0 %v570_v0  ;;  %423 = vmatprep.mubr.msk.f32.mxu0 %vm571_vm0, %v570_v0  ;;  %v79_v3 = vld [vmem:[#allocation5] sm:$0x3]  ;;  %vm89_vm1 = vcmask 130048   ;;  %v572_v4 = vmov 1966171168   ;;  %v634_v18 = vld [vmem:[#allocation2] sm:$0xff] }
  0x33   :  { %426 = vmatprep.subr.mxu1 %v570_v0  ;;  %434 = vmatprep.mubr.msk.f32.mxu1 %vm571_vm0, %v570_v0  ;;  %v165_v5 = vunpack.c.l.s4 %v572_v4  ;;  %v627_v8 = vshrl.u32 %v167_v6, 7  ;;  %v407_v9 = vld [vmem:[%s666_s3] ss:$0 sm:$0xff]  ;;  %vm198_vm2 = vcmask 261120   ;;  %v636_v21 = vld [vmem:[#allocation2 + $0x8] sm:$0xff]  ;;  %v208_v27 = vand.u32 127, %v167_v6 }
  0x34   :  { %420 = vmatpush3.msra.mxu0 %v81_v1  ;;  %vm217_vm3 = vcmask 1041409   ;;  %vm220_vm4 = vcmask 58368   ;;  %v573_v35 = vmov 0   ;;  %v305_v58 = vld [vmem:[#allocation8 + $0x18] sm:$0xff]  ;;  %v304_v59 = vld [vmem:[#allocation8 + $0x10] sm:$0xff]  ;;  %v303_v60 = vld [vmem:[#allocation8 + $0x8] sm:$0xff] }
  0x35   :  { %421 = vmatprep.subr.mxu0 %v570_v0  ;;  %v166_v7 = vunpack.c.0.s8 %v165_v5  ;;  %v188_v15 = vsub.s32 0, %v627_v8  ;;  %v211_v29 = vsub.s32 %v208_v27, %v627_v8  ;;  %449 = vset.pattern.permute.xlu0 %v573_v35  ;;  %v231_v36 = vsub.s32 1, %v627_v8  ;;  %v302_v61 = vld [vmem:[#allocation8] sm:$0xff]  ;;  %s574_s18 = smov [#allocation10]  }
  0x36   :  { %422 = vmatpush3.msra.mxu0 %v80_v2  ;;  %448 = vset.pattern.permute.xlu1 %v573_v35  ;;  %s396_s19 = sshll.u32 %s574_s18, 4  ;;  %vm388_vm5 = vcmask 254976   ;;  %s397_s19 = int_to_ptr.vmem [resolvable:$true] %s396_s19 }
  0x37   :  { %424 = vmatmul.mubr.msk.f32.vlgmr.msra.gmra.mxu0 %vm89_vm1, %v79_v3  ;;  %v169_v10 = vsub.s32 %v166_v7, %v627_v8  ;;  %427 = vmatpush3.msra.mxu1 %v305_v58  ;;  %s536_s20 = scalar_lea.vmem %s397_s19, 32  ;;  %p541_p7 = scmp.lt.s32.totalorder %s397_s19, %s397_s19 }
  0x38   :  { %428 = vmatprep.subr.mxu1 %v570_v0  ;;  %p537_p6 = scmp.ne.s32.totalorder %s397_s19, %s536_s20  ;;  %p542_p8 = scmp.lt.s32.totalorder %s536_s20, %s536_s20 }
  0x39   :  { %429 = vmatpush3.msra.mxu1 %v304_v59 }
  0x3a   :  { %430 = vmatprep.subr.mxu1 %v570_v0  ;;  %p543_p9 = por %p542_p8, %p541_p7 }
  0x3b   :  { %431 = vmatpush3.msra.mxu1 %v303_v60 }
  0x3c   :  { %432 = vmatprep.subr.mxu1 %v570_v0  ;;  %p544_p10 = pnand %p543_p9, %p537_p6 }
  0x3d   :  { %433 = vmatpush3.msra.mxu1 %v302_v61 }
  0xf7   :  { %v159_v11 = vpop.f32.mrf.mxu0 }
  0xf8   :  { %v160_v12 = vadd.f32 %v407_v9, %v159_v11 }
  0xf9   :  { %v425_v13 = vpop.f32.mrf.mxu0 }
  0xfa   :  { %v170_v14 = vrot.slane %v160_v12, %v169_v10 }
  0xfc   :  { %v171_v16 = vcombine.high %v170_v14, %v170_v14  ;;  %v178_v17 = vrot.slane %v170_v14, %v169_v10 }
  0xfe   :  { %v189_v19 = vrot.slane %v178_v17, %v188_v15  ;;  %v185_v20 = vrot.slane %v171_v16, %v169_v10  ;;  %v409_v17 = vld [vmem:[%s668_s5] ss:$0 sm:$0xff] }
 0x100   :  { %v196_v22 = vmul.f32 %v189_v19, %v634_v18  ;;  %v193_v23 = vrot.slane %v185_v20, %v188_v15 }
 0x102   :  { %v199_v24 = vsel %vm198_vm2, %v196_v22, 0.0  ;;  %v197_v25 = vmul.f32 %v193_v23, %v636_v21 }
 0x103   :  { %200 = vadd.xlane.f32.xlu0 %v199_v24 }
 0x104   :  { %v202_v26 = vsel %vm198_vm2, %v197_v25, 0.0 }
 0x107   :  { %203 = vadd.xlane.f32.xlu0 %v202_v26 }
 0x18c   :  { %v201_v28 = vpop.xlane.xlu0 %200 }
 0x18d   :  { %v212_v31 = vrot.slane %v201_v28, %v211_v29 }
 0x190   :  { %v204_v30 = vpop.xlane.xlu0 %203 }
 0x191   :  { %v216_v32 = vrot.slane %v204_v30, %v211_v29 }
 0x193   :  { %v218_v33 = vsel %vm217_vm3, %v216_v32, %v212_v31 }
 0x194   :  { %v221_v34 = vsel %vm220_vm4, %v218_v33, -inf }
 0x195   :  { %222 = vmax.xlane.f32.xlu1 %v221_v34 }
 0x21e   :  { %v223_v37 = vpop.xlane.xlu1 %222 }
 0x21f   :  { %v228_v38 = vrot.slane %v223_v37, %v188_v15  ;;  %v232_v39 = vrot.slane %v223_v37, %v231_v36 }
 0x221   :  { %v235_v40 = vsub.f32 %v201_v28, %v228_v38  ;;  %v236_v41 = vsub.f32 %v204_v30, %v232_v39 }
 0x223   :  { %v237_v42 = vmul.f32 1.442695, %v235_v40  ;;  %v239_v43 = vmul.f32 1.442695, %v236_v41 }
 0x225   :  { %450 = vpow2.f32 %v237_v42 }
 0x226   :  { %452 = vpow2.f32 %v239_v43 }
 0x232   :  { %v451_v44 = vpop.eup %450 }
 0x233   :  { %v453_v45 = vpop.eup %452  ;;  %244 = vperm.xlu1 %448, %v451_v44  }
 0x234   :  { %247 = vperm.xlu0 %449, %v453_v45  }
 0x2ae   :  { %v245_v46 = vpop.permute.xlu1 %244 }
 0x2af   :  { %v248_v47 = vpop.permute.xlu0 %247  ;;  %v252_v48 = vrot.slane %v245_v46, %v211_v29 }
 0x2b0   :  { %v256_v49 = vrot.slane %v248_v47, %v211_v29 }
 0x2b2   :  { %v257_v50 = vsel %vm217_vm3, %v256_v49, %v252_v48 }
 0x2b3   :  { %v259_v51 = vsel %vm220_vm4, %v257_v50, 0.0 }
 0x2b4   :  { %260 = vadd.xlane.f32.xlu1 %v259_v51 }
 0x33d   :  { %v261_v52 = vpop.xlane.xlu1 %260 }
 0x33e   :  { %454 = vrcp.f32 %v261_v52 }
 0x34b   :  { %v455_v53 = vpop.eup %454 }
 0x34c   :  { %v267_v54 = vrot.slane %v455_v53, %v188_v15  ;;  %v271_v56 = vrot.slane %v455_v53, %v231_v36 }
 0x34e   :  { %v274_v55 = vmul.f32 %v451_v44, %v267_v54  ;;  %v275_v57 = vmul.f32 %v453_v45, %v271_v56 }
 0x350   :  { %278 = vperm.xlu0 %449, %v274_v55  }
 0x354   :  { %283 = vperm.xlu0 %449, %v275_v57  }
 0x3cb   :  { %v279_v62 = vpop.permute.xlu0 %278 }
 0x3cc   :  { %v286_v63 = vmul.f32 %v279_v62, %v634_v18 }
 0x3ce   :  { %v288_v1 = vsel %vm198_vm2, %v286_v63, 0.0 }
 0x3cf   :  { %v289_v2 = vrot.slane %v288_v1, 4  ;;  %v284_v3 = vpop.permute.xlu0 %283 }
 0x3d0   :  { %v287_v4 = vmul.f32 %v284_v3, %v636_v21 }
 0x3d1   :  { %v290_v5 = vadd.f32 %v289_v2, %v288_v1 }
 0x3d2   :  { %v295_v6 = vsel %vm198_vm2, %v287_v4, 0.0 }
 0x3d3   :  { %v291_v7 = vrot.slane %v290_v5, 2  ;;  %v296_v8 = vrot.slane %v295_v6, 4 }
 0x3d5   :  { %v292_v9 = vadd.f32 %v291_v7, %v290_v5  ;;  %v297_v10 = vadd.f32 %v296_v8, %v295_v6 }
 0x3d7   :  { %v298_v11 = vrot.slane %v297_v10, 2  ;;  %v293_v12 = vrot.slane %v292_v9, 1 }
 0x3d9   :  { %v299_v0 = vadd.f32 %v298_v11, %v297_v10  ;;  %v294_v14 = vadd.f32 %v293_v12, %v292_v9 }
 0x3db   :  { %v300_v13 = vrot.slane %v299_v0, 1 }
 0x3dd   :  { %v301_v15 = vadd.f32 %v300_v13, %v299_v0 }
 0x3df   :  { %v315_v16 = vsel %vm217_vm3, %v301_v15, %v294_v14 }
 0x3e0   :  { %435 = vmatmul.mubr.msk.f32.vlgmr.msra.gmra.mxu1 %vm198_vm2, %v315_v16 }
 0x4a0   :  { %v384_v18 = vpop.f32.mrf.mxu1 }
 0x4a1   :  { %v385_v19 = vadd.f32 %v409_v17, %v384_v18 }
 0x4a2   :  { %v436_v20 = vpop.f32.mrf.mxu1 }
 0x4a3   :  { %389 = vst.msk [vmem:[#allocation10] sm:$0x3] %vm388_vm5, %v385_v19 }
 0x4a4   :  { %547 = shalt.err (!%p544_p10)
}
 0x4a5   :  { %399 = dma.vmem_to_hbm [thread:$0]  %s397_s19, 32, %s669_s6, [#allocation4]  }
 0x4a6   :  { %562 = dma.done.wait [#allocation4], 32  }
 0x4a7   :  { %563 = vsyncadd [#allocation4], 4294967264 }
 0x4a8   :  { %403 = vsyncpa [#allocation3], 1 }
 0x4a9   :  { %404 = vsyncpa [#allocation6], 1 }
 0x4aa   :  { %405 = vsyncpa [#allocation9], 1 }
 0x4ab   :  { %406 = vsyncpa [#allocation4], 1 }

</bundles_post_ra>
